<compile_context>
chip_gen: v7x
topology: tpu7x:2x2x1
jax: 0.10.0
libtpu: 0.0.40
codegen_flags: <defaults>
</compile_context>

<pallas_src>
import functools

import jax
import jax.numpy as jnp
from jax.experimental import pallas as pl
from jax.experimental.pallas import tpu as pltpu


def _round_up(x, m):
    return ((x + m - 1) // m) * m


def _vmem_physical_bytes():
    try:
        return pltpu.get_tpu_info().vmem_capacity_bytes
    except Exception:  # pragma: no cover - conservative fallback (v7x-sized)
        return 64 << 20


def _pick_tile_rows(n_rows, d_in, d_out_pad, resident_bytes):
    """Footprint-driven batch tile.

    Multiple of 16 (bf16 sublane pack), sized so that
      resident weights + 2x(tm*d_in*4) + 2x(tm*d_out_pad*4)
    stays under a VMEM budget, and capped so the grid has >= 2 blocks when n
    is large enough (v7x 2-TC sharding / DMA-compute overlap).
    Returns (tm, vmem_limit_bytes_or_None).
    """
    phys = _vmem_physical_bytes()
    budget = min(phys // 2, 48 << 20)
    per_row = 2 * 4 * (d_in + d_out_pad)          # double-buffered f32 in/out
    tm_budget = max(16, ((budget - resident_bytes) // per_row) // 16 * 16)
    tm = min(1024, tm_budget, _round_up(max(n_rows, 1), 16))
    if n_rows >= 32:                               # keep >= 2 grid blocks
        tm = min(tm, _round_up(pl.cdiv(n_rows, 2), 16))
    tm = max(16, tm)

    footprint = resident_bytes + per_row * tm
    vmem_limit = None
    if footprint * 1.2 > (16 << 20):               # smallest default (v5e)
        vmem_limit = int(min(phys // 2, max(int(footprint * 1.5), 32 << 20)))
    return tm, vmem_limit


def _ae_kernel(x_ref, we_ref, be_ref, wd_ref, bd_ref, o_ref):
    # x_ref:  [TM, D_in]      f32  activation tile (streamed over the grid;
    #                              cast to bf16 in-kernel -> 4 B/elem HBM traffic)
    # we_ref: [D_in, H_pad]   bf16 encoder weight (VMEM-resident, single-buffered)
    # be_ref: [1, H_pad]      f32  encoder bias   (VMEM-resident)
    # wd_ref: [H_pad, D_outp] bf16 decoder weight (VMEM-resident)
    # bd_ref: [1, D_outp]     f32  decoder bias   (VMEM-resident)
    # o_ref:  [TM, D_outp]    f32  output tile (partial last block is masked)
    x = x_ref[...].astype(we_ref.dtype)
    h = jnp.dot(x, we_ref[...], preferred_element_type=jnp.float32)
    h = jnp.maximum(h + be_ref[...], 0.0)          # bias + ReLU in f32 (VPU)
    y = jnp.dot(h.astype(wd_ref.dtype), wd_ref[...],
                preferred_element_type=jnp.float32)
    o_ref[...] = (y + bd_ref[...]).astype(o_ref.dtype)


def prepare_autoencoder_params(w_enc, b_enc, w_dec, b_dec):
    """Pad/cast parameters ONCE (hoisted off the per-call forward path)."""
    d_in, hidden = w_enc.shape
    d_out = w_dec.shape[1]
    h_pad = _round_up(hidden, 128)                 # lane-aligned hidden
    d_out_pad = _round_up(d_out, 128)              # unmasked lane-dense stores

    we_p = jnp.zeros((d_in, h_pad), jnp.bfloat16).at[:, :hidden].set(
        w_enc.astype(jnp.bfloat16))
    be_p = jnp.zeros((1, h_pad), jnp.float32).at[0, :hidden].set(
        b_enc.astype(jnp.float32))
    wd_p = jnp.zeros((h_pad, d_out_pad), jnp.bfloat16).at[:hidden, :d_out].set(
        w_dec.astype(jnp.bfloat16))
    bd_p = jnp.zeros((1, d_out_pad), jnp.float32).at[0, :d_out].set(
        b_dec.astype(jnp.float32))
    return we_p, be_p, wd_p, bd_p, d_out


@functools.partial(jax.jit, static_argnames=("d_out",))
def autoencoder_forward(x_nchw, we_p, be_p, wd_p, bd_p, *, d_out):
    """x_nchw: [N, C, H, W] float32 -> [N, d_out] float32."""
    n = x_nchw.shape[0]
    x_flat = x_nchw.reshape(n, -1).astype(jnp.float32)   # glue: flatten(1)
    d_in = x_flat.shape[1]
    h_pad = we_p.shape[1]
    d_out_pad = wd_p.shape[1]

    resident_bytes = (we_p.size * 2 + wd_p.size * 2
                      + be_p.size * 4 + bd_p.size * 4)
    tm, vmem_limit = _pick_tile_rows(n, d_in, d_out_pad, resident_bytes)
    grid = (pl.cdiv(n, tm),)

    out = pl.pallas_call(
        _ae_kernel,
        out_shape=jax.ShapeDtypeStruct((n, d_out_pad), jnp.float32),
        grid=grid,
        in_specs=[
            # streamed f32 activations (double-buffered by default)
            pl.BlockSpec((tm, d_in), lambda i: (i, 0)),
            # constant-index params: single-buffered, VMEM-resident
            pl.BlockSpec((d_in, h_pad), lambda i: (0, 0),
                         pipeline_mode=pl.Buffered(1)),
            pl.BlockSpec((1, h_pad), lambda i: (0, 0),
                         pipeline_mode=pl.Buffered(1)),
            pl.BlockSpec((h_pad, d_out_pad), lambda i: (0, 0),
                         pipeline_mode=pl.Buffered(1)),
            pl.BlockSpec((1, d_out_pad), lambda i: (0, 0),
                         pipeline_mode=pl.Buffered(1)),
        ],
        out_specs=pl.BlockSpec((tm, d_out_pad), lambda i: (i, 0)),
        compiler_params=pltpu.CompilerParams(
            dimension_semantics=("parallel",),
            vmem_limit_bytes=vmem_limit),
    )(x_flat, we_p, be_p, wd_p, bd_p)

    if d_out_pad != d_out:        # only when d_out isn't already lane-aligned
        out = out[:, :d_out]
    return out


def _reference_f32(x_nchw, w_enc, b_enc, w_dec, b_dec):
    n = x_nchw.shape[0]
    x_flat = x_nchw.reshape(n, -1)
    h = jnp.maximum(x_flat @ w_enc + b_enc, 0.0)
    return h @ w_dec + b_dec


def _reference_bf16(x_nchw, w_enc, b_enc, w_dec, b_dec):
    # Mirrors the kernel's bf16-input / f32-accumulate arithmetic.
    n = x_nchw.shape[0]
    xb = x_nchw.reshape(n, -1).astype(jnp.bfloat16)
    h = jnp.dot(xb, w_enc.astype(jnp.bfloat16),
                preferred_element_type=jnp.float32) + b_enc
    h = jnp.maximum(h, 0.0)
    y = jnp.dot(h.astype(jnp.bfloat16), w_dec.astype(jnp.bfloat16),
                preferred_element_type=jnp.float32) + b_dec
    return y


if __name__ == "__main__":
    # Small shapes consistent with the module's forward: NCHW input with >=2
    # channels (evaluate() indexes x[:, 1, :, :]), flattened map output.
    N, C, H, W = 2, 4, 16, 16
    HIDDEN = 32
    D_IN = C * H * W          # 1024
    D_OUT = H * W             # 256

    key = jax.random.PRNGKey(0)
    k_x, k_we, k_be, k_wd, k_bd = jax.random.split(key, 5)

    x = jax.random.normal(k_x, (N, C, H, W), dtype=jnp.float32)
    # Deterministic synthetic parameters (Glorot-ish scale).
    w_enc = jax.random.normal(k_we, (D_IN, HIDDEN), dtype=jnp.float32) * (1.0 / jnp.sqrt(D_IN))
    b_enc = jax.random.normal(k_be, (HIDDEN,), dtype=jnp.float32) * 0.01
    w_dec = jax.random.normal(k_wd, (HIDDEN, D_OUT), dtype=jnp.float32) * (1.0 / jnp.sqrt(HIDDEN))
    b_dec = jax.random.normal(k_bd, (D_OUT,), dtype=jnp.float32) * 0.01

    # Parameter pad/cast happens once, off the hot path.
    we_p, be_p, wd_p, bd_p, d_out = prepare_autoencoder_params(
        w_enc, b_enc, w_dec, b_dec)

    y = autoencoder_forward(x, we_p, be_p, wd_p, bd_p, d_out=d_out)
    y = jax.block_until_ready(y)

    assert y.shape == (N, D_OUT), y.shape
    # Match against a bf16-input / f32-accumulate reference (same arithmetic).
    y_ref_bf16 = _reference_bf16(x, w_enc, b_enc, w_dec, b_dec)
    assert jnp.allclose(y, y_ref_bf16, atol=5e-3, rtol=5e-3), \
        "mismatch vs bf16-matched JAX reference"
    # Loose sanity check against the pure-f32 reference (bf16 rounding only).
    y_ref_f32 = _reference_f32(x, w_enc, b_enc, w_dec, b_dec)
    assert jnp.allclose(y, y_ref_f32, atol=5e-2, rtol=5e-2), \
        "mismatch vs f32 JAX reference"

    print("KERNEL_OK")
</pallas_src>

<mosaic_0001>
module attributes {stable_mosaic.version = 11 : i64} {
  func.func @_ae_kernel(%arg0: i32, %arg1: memref<16x1024xf32, #tpu.memory_space<vmem>>, %arg2: memref<1024x128xbf16, #tpu.memory_space<vmem>>, %arg3: memref<1x128xf32, #tpu.memory_space<vmem>>, %arg4: memref<128x256xbf16, #tpu.memory_space<vmem>>, %arg5: memref<1x256xf32, #tpu.memory_space<vmem>>, %arg6: memref<16x256xf32, #tpu.memory_space<vmem>>) attributes {dimension_semantics = [#tpu.dimension_semantics<parallel>], iteration_bounds = array<i64: 1>, scalar_prefetch = 0 : i64, scratch_operands = 0 : i64, tpu.core_type = #tpu.core_type<tc>, window_params = [{transform_indices = @transform_0, window_bounds = array<i64: 16, 1024>}, {pipeline_mode = #tpu.pipeline_mode<synchronous>, transform_indices = @transform_1, window_bounds = array<i64: 1024, 128>}, {pipeline_mode = #tpu.pipeline_mode<synchronous>, transform_indices = @transform_2, window_bounds = array<i64: 1, 128>}, {pipeline_mode = #tpu.pipeline_mode<synchronous>, transform_indices = @transform_3, window_bounds = array<i64: 128, 256>}, {pipeline_mode = #tpu.pipeline_mode<synchronous>, transform_indices = @transform_4, window_bounds = array<i64: 1, 256>}, {transform_indices = @transform_5, window_bounds = array<i64: 16, 256>}]} {
    %c0 = arith.constant 0 : index
    %c0_0 = arith.constant 0 : index
    %0 = vector.load %arg1[%c0, %c0_0] : memref<16x1024xf32, #tpu.memory_space<vmem>>, vector<16x1024xf32>
    %1 = arith.truncf %0 : vector<16x1024xf32> to vector<16x1024xbf16>
    %c0_1 = arith.constant 0 : index
    %c0_2 = arith.constant 0 : index
    %2 = vector.load %arg2[%c0_1, %c0_2] : memref<1024x128xbf16, #tpu.memory_space<vmem>>, vector<1024x128xbf16>
    %cst = arith.constant dense<0.000000e+00> : vector<16x128xf32>
    %3 = tpu.matmul %1, %2, %cst {dimension_numbers = #tpu.dot_dimension_numbers<[1], [0], [0], [1], [0, 0, 1, 1], [], []>} : vector<16x1024xbf16>, vector<1024x128xbf16>, vector<16x128xf32> -> vector<16x128xf32>
    %c0_3 = arith.constant 0 : index
    %c0_4 = arith.constant 0 : index
    %4 = vector.load %arg3[%c0_3, %c0_4] : memref<1x128xf32, #tpu.memory_space<vmem>>, vector<1x128xf32>
    %5 = vector.broadcast %4 : vector<1x128xf32> to vector<16x128xf32>
    %6 = arith.addf %3, %5 : vector<16x128xf32>
    %cst_5 = arith.constant 0.000000e+00 : f32
    %7 = vector.broadcast %cst_5 : f32 to vector<16x128xf32>
    %8 = arith.maximumf %6, %7 : vector<16x128xf32>
    %9 = arith.truncf %8 : vector<16x128xf32> to vector<16x128xbf16>
    %c0_6 = arith.constant 0 : index
    %c0_7 = arith.constant 0 : index
    %10 = vector.load %arg4[%c0_6, %c0_7] : memref<128x256xbf16, #tpu.memory_space<vmem>>, vector<128x256xbf16>
    %cst_8 = arith.constant dense<0.000000e+00> : vector<16x256xf32>
    %11 = tpu.matmul %9, %10, %cst_8 {dimension_numbers = #tpu.dot_dimension_numbers<[1], [0], [0], [1], [0, 0, 1, 1], [], []>} : vector<16x128xbf16>, vector<128x256xbf16>, vector<16x256xf32> -> vector<16x256xf32>
    %c0_9 = arith.constant 0 : index
    %c0_10 = arith.constant 0 : index
    %12 = vector.load %arg5[%c0_9, %c0_10] : memref<1x256xf32, #tpu.memory_space<vmem>>, vector<1x256xf32>
    %13 = vector.broadcast %12 : vector<1x256xf32> to vector<16x256xf32>
    %14 = arith.addf %11, %13 : vector<16x256xf32>
    %c0_11 = arith.constant 0 : index
    %c0_12 = arith.constant 0 : index
    %15 = vector.load %arg6[%c0_11, %c0_12] : memref<16x256xf32, #tpu.memory_space<vmem>>, vector<16x256xf32>
    tpu.vector_store %arg6[%c0_11, %c0_12], %14 {strides = array<i32>} : memref<16x256xf32, #tpu.memory_space<vmem>>, vector<16x256xf32>,
    return
  }
  func.func @transform_0(%arg0: i32) -> (i32, i32) {
    %c0_i32 = arith.constant 0 : i32
    %c0_i32_0 = arith.constant 0 : i32
    return %arg0, %c0_i32 : i32, i32
  }
  func.func @transform_1(%arg0: i32) -> (i32, i32) {
    %c0_i32 = arith.constant 0 : i32
    %c0_i32_0 = arith.constant 0 : i32
    %c0_i32_1 = arith.constant 0 : i32
    return %c0_i32, %c0_i32_0 : i32, i32
  }
  func.func @transform_2(%arg0: i32) -> (i32, i32) {
    %c0_i32 = arith.constant 0 : i32
    %c0_i32_0 = arith.constant 0 : i32
    %c0_i32_1 = arith.constant 0 : i32
    return %c0_i32, %c0_i32_0 : i32, i32
  }
  func.func @transform_3(%arg0: i32) -> (i32, i32) {
    %c0_i32 = arith.constant 0 : i32
    %c0_i32_0 = arith.constant 0 : i32
    %c0_i32_1 = arith.constant 0 : i32
    return %c0_i32, %c0_i32_0 : i32, i32
  }
  func.func @transform_4(%arg0: i32) -> (i32, i32) {
    %c0_i32 = arith.constant 0 : i32
    %c0_i32_0 = arith.constant 0 : i32
    %c0_i32_1 = arith.constant 0 : i32
    return %c0_i32, %c0_i32_0 : i32, i32
  }
  func.func @transform_5(%arg0: i32) -> (i32, i32) {
    %c0_i32 = arith.constant 0 : i32
    %c0_i32_0 = arith.constant 0 : i32
    return %arg0, %c0_i32 : i32, i32
  }
}

</mosaic_0001>

<bundles_post_ra>
// kernel: autoencoder_forward.1
= control target key start
LH: loop header
LB: loop body
LE: loop exit
PB: predicated region body
PF: predicated region fallthrough
CT: control target
= control target key end

     0   :  { %10 = vsyncpa [#allocation3], 0  ;;  %s1680_s0 = inlined_call_operand.vmem [shape: f32[2,1024], index: 0, kind: input, shape index: {}]   ;;  %s1681_s1 = inlined_call_operand.hbm [shape: bf16[1024,128], index: 1, kind: input, shape index: {}]   ;;  %s1682_s2 = inlined_call_operand.vmem [shape: f32[1,128], index: 2, kind: input, shape index: {}]   ;;  %s1683_s3 = inlined_call_operand.vmem [shape: bf16[128,256], index: 3, kind: input, shape index: {}]   ;;  %s1684_s4 = inlined_call_operand.vmem [shape: f32[1,256], index: 4, kind: input, shape index: {}]   ;;  %s1685_s5 = inlined_call_operand.hbm [shape: f32[2,256], index: 5, kind: output, shape index: {}]  }
   0x1   :  { %11 = vsyncpa [#allocation4], 0  ;;  %s1485_s18 = smov [#allocation2]   ;;  %s1437_s22 = scalar_lea.hbm %s1681_s1, 8192 }
   0x2   :  { %s19_s19 = sshll.u32 %s1485_s18, 4  ;;  %p1438_p0 = scmp.ne.s32.totalorder %s1681_s1, %s1437_s22  ;;  %s20_s19 = int_to_ptr.vmem [resolvable:$true] %s19_s19 }
   0x3   :  { %p1441_p1 = scmp.lt.u32.totalorder %s1437_s22, %s1681_s1 }
   0x5   :  { %p1443_p2 = pnand %p1441_p1, %p1438_p0 }
   0x7   :  { %1446 = shalt.err (!%p1443_p2)
}
   0x8   :  { %s1447_s27 = scalar_lea.vmem %s20_s19, 8192  ;;  %p1452_p4 = scmp.lt.s32.totalorder %s20_s19, %s20_s19 }
   0x9   :  { %p1448_p3 = scmp.ne.s32.totalorder %s20_s19, %s1447_s27  ;;  %p1453_p5 = scmp.lt.s32.totalorder %s1447_s27, %s1447_s27 }
   0xb   :  { %p1454_p6 = por %p1453_p5, %p1452_p4 }
   0xd   :  { %p1455_p7 = pnand %p1454_p6, %p1448_p3 }
   0xf   :  { %1458 = shalt.err (!%p1455_p7)
}
  0x10   :  { %s1486_s28 = smov 64   ;;  %s1487_s29 = smov 4  }
  0x11   :  { %25 = dma.hbm_to_vmem [thread:$0]  %s1681_s1, 8192, %s20_s19, [#allocation3], %s1486_s28, %s1486_s28, %s1487_s29  }
  0x12   :  { %1481 = dma.done.wait [#allocation3], 8192  }
  0x13   :  { %1482 = vsyncadd [#allocation3], 4294959104  ;;  %v1325_v0 = vld [vmem:[#allocation2 + $0x40] sm:$0xff]   ;;  %v1329_v4 = vld [vmem:[#allocation2 + $0x48] sm:$0xff]   ;;  %v1488_v25 = vmov 1983009808   ;;  %v75_v27 = vlaneseq }
  0x14   :  { %v1326_v1 = vld [vmem:[#allocation2 + $0xc0] sm:$0xff]   ;;  %1231 = vmatprep.subr.bf16.mxu0 %v1325_v0  ;;  %v1330_v5 = vld [vmem:[#allocation2 + $0xc8] sm:$0xff]   ;;  %v1333_v8 = vld [vmem:[#allocation2 + $0x50] sm:$0xff]   ;;  %v73_v26 = vunpack.c.l.s4 %v1488_v25 }
  0x15   :  { %v1327_v2 = vld [vmem:[#allocation2] sm:$0xff]   ;;  %1253 = vmatprep.subr.bf16.mxu1 %v1326_v1  ;;  %v1331_v6 = vld [vmem:[#allocation2 + $0x8] sm:$0xff]   ;;  %v1334_v9 = vld [vmem:[#allocation2 + $0xd0] sm:$0xff]   ;;  %v1536_v33 = vshrl.u32 %v75_v27, 7 }
  0x16   :  { %v1328_v3 = vld [vmem:[#allocation2 + $0x80] sm:$0xff]   ;;  %1232 = vmatpush3.bf16.msra.mxu0 %v1327_v2  ;;  %v1332_v7 = vld [vmem:[#allocation2 + $0x88] sm:$0xff]   ;;  %v1335_v10 = vld [vmem:[#allocation2 + $0x10] sm:$0xff]   ;;  %v74_v32 = vunpack.c.0.s8 %v73_v26 }
  0x17   :  { %1254 = vmatpush3.bf16.msra.mxu1 %v1328_v3  ;;  %1233 = vmatprep.subr.bf16.mxu0 %v1329_v4  ;;  %v1336_v11 = vld [vmem:[#allocation2 + $0x90] sm:$0xff]   ;;  %v1337_v12 = vld [vmem:[#allocation2 + $0x58] sm:$0xff]   ;;  %v1341_v16 = vld [vmem:[#allocation2 + $0x60] sm:$0xff]  }
  0x18   :  { %1255 = vmatprep.subr.bf16.mxu1 %v1330_v5  ;;  %v1338_v13 = vld [vmem:[#allocation2 + $0xd8] sm:$0xff]   ;;  %v1342_v17 = vld [vmem:[#allocation2 + $0xe0] sm:$0xff]   ;;  %v1345_v20 = vld [vmem:[#allocation2 + $0x68] sm:$0xff]   ;;  %v1539_v37 = vsub.s32 %v74_v32, %v1536_v33 }
  0x19   :  { %v1339_v14 = vld [vmem:[#allocation2 + $0x18] sm:$0xff]   ;;  %v1343_v18 = vld [vmem:[#allocation2 + $0x20] sm:$0xff]   ;;  %v1346_v21 = vld [vmem:[#allocation2 + $0xe8] sm:$0xff]  }
  0x1a   :  { %1234 = vmatpush3.bf16.msra.mxu0 %v1331_v6  ;;  %v1340_v15 = vld [vmem:[#allocation2 + $0x98] sm:$0xff]   ;;  %v1344_v19 = vld [vmem:[#allocation2 + $0xa0] sm:$0xff]   ;;  %v1347_v22 = vld [vmem:[#allocation2 + $0x28] sm:$0xff]  }
  0x1b   :  { %1256 = vmatpush3.bf16.msra.mxu1 %v1332_v7  ;;  %1235 = vmatprep.subr.bf16.mxu0 %v1333_v8  ;;  %v1348_v23 = vld [vmem:[#allocation2 + $0xa8] sm:$0xff]   ;;  %v1349_v24 = vld [vmem:[#allocation2 + $0x70] sm:$0xff]   ;;  %v1353_v31 = vld [vmem:[#allocation2 + $0x78] sm:$0xff]  }
  0x1c   :  { %1257 = vmatprep.subr.bf16.mxu1 %v1334_v9  ;;  %v1350_v28 = vld [vmem:[#allocation2 + $0xf0] sm:$0xff]   ;;  %v1354_v34 = vld [vmem:[#allocation2 + $0xf8] sm:$0xff]   ;;  %v1369_v53 = vld [vmem:[#allocation2 + $0x140] sm:$0xff]  }
  0x1d   :  { %v1351_v29 = vld [vmem:[#allocation2 + $0x30] sm:$0xff]   ;;  %v1355_v35 = vld [vmem:[#allocation2 + $0x38] sm:$0xff]   ;;  %v1370_v58 = vld [vmem:[#allocation2 + $0x1c0] sm:$0xff]  }
  0x1e   :  { %1236 = vmatpush3.bf16.msra.mxu0 %v1335_v10  ;;  %v1352_v30 = vld [vmem:[#allocation2 + $0xb0] sm:$0xff]   ;;  %v1356_v36 = vld [vmem:[#allocation2 + $0xb8] sm:$0xff]   ;;  %v1371_v62 = vld [vmem:[#allocation2 + $0x100] sm:$0xff]  }
  0x1f   :  { %1258 = vmatpush3.bf16.msra.mxu1 %v1336_v11  ;;  %1237 = vmatprep.subr.bf16.mxu0 %v1337_v12  ;;  %v1357_v38 = vld [vmem:[%s1680_s0] ss:$16 sps:$4 sm:$0xff]   ;;  %v1365_v43 = vld [vmem:[%s1680_s0 + $0x4] ss:$16 sps:$4 sm:$0xff]   ;;  %v1373_v4 = vld [vmem:[#allocation2 + $0x148] sm:$0xff]  }
  0x20   :  { %1259 = vmatprep.subr.bf16.mxu1 %v1338_v13  ;;  %v1359_v39 = vld [vmem:[%s1680_s0 + $0x20] ss:$16 sps:$4 sm:$0xff]   ;;  %v78_v42 = vrot.slane %v1357_v38, %v1539_v37  ;;  %v1366_v44 = vld [vmem:[%s1680_s0 + $0x24] ss:$16 sps:$4 sm:$0xff]   ;;  %v85_v50 = vrot.slane %v1365_v43, %v1539_v37  ;;  %v1374_v7 = vld [vmem:[#allocation2 + $0x1c8] sm:$0xff]  }
  0x21   :  { %v1361_v40 = vld [vmem:[%s1680_s0 + $0x40] ss:$16 sps:$4 sm:$0xff]   ;;  %v1367_v45 = vld [vmem:[%s1680_s0 + $0x44] ss:$16 sps:$4 sm:$0xff]   ;;  %v92_v46 = vrot.slane %v1359_v39, %v1539_v37  ;;  %v99_v51 = vrot.slane %v1366_v44, %v1539_v37  ;;  %v1375_v8 = vld [vmem:[#allocation2 + $0x108] sm:$0xff]  }
  0x22   :  { %1238 = vmatpush3.bf16.msra.mxu0 %v1339_v14  ;;  %v1363_v41 = vld [vmem:[%s1680_s0 + $0x60] ss:$16 sps:$4 sm:$0xff]   ;;  %v150_v47 = vrot.slane %v1361_v40, %v1539_v37  ;;  %v1368_v49 = vld [vmem:[%s1680_s0 + $0x64] ss:$16 sps:$4 sm:$0xff]   ;;  %v157_v52 = vrot.slane %v1367_v45, %v1539_v37  ;;  %v1376_v9 = vld [vmem:[#allocation2 + $0x188] sm:$0xff]  }
  0x23   :  { %1260 = vmatpush3.bf16.msra.mxu1 %v1340_v15  ;;  %1239 = vmatprep.subr.bf16.mxu0 %v1341_v16  ;;  %v164_v48 = vrot.slane %v1363_v41, %v1539_v37  ;;  %v101_v54 = vcombine.high %v78_v42, %v92_v46  ;;  %v171_v56 = vrot.slane %v1368_v49, %v1539_v37  ;;  %v1372_v2 = vld [vmem:[#allocation2 + $0x180] sm:$0xff]   ;;  %v1377_v10 = vld [vmem:[#allocation2 + $0x150] sm:$0xff]   ;;  %v1381_v14 = vld [vmem:[#allocation2 + $0x158] sm:$0xff]  }
  0x24   :  { %1261 = vmatprep.subr.bf16.mxu1 %v1342_v17  ;;  %v100_v57 = vcombine.low %v78_v42, %v92_v46  ;;  %v103_v59 = vcombine.high %v85_v50, %v99_v51  ;;  %v102_v61 = vcombine.low %v85_v50, %v99_v51  ;;  %v1378_v11 = vld [vmem:[#allocation2 + $0x1d0] sm:$0xff]   ;;  %v1382_v15 = vld [vmem:[#allocation2 + $0x1d8] sm:$0xff]   ;;  %v1392_v25 = vld [vmem:[#allocation2 + $0x1a8] sm:$0xff]  }
  0x25   :  { %v173_v55 = vcombine.high %v150_v47, %v164_v48  ;;  %v172_v60 = vcombine.low %v150_v47, %v164_v48  ;;  %v175_v0 = vcombine.high %v157_v52, %v171_v56  ;;  %v174_v1 = vcombine.low %v157_v52, %v171_v56  ;;  %v1379_v12 = vld [vmem:[#allocation2 + $0x110] sm:$0xff]   ;;  %v1383_v16 = vld [vmem:[#allocation2 + $0x118] sm:$0xff]  }
  0x26   :  { %1240 = vmatpush3.bf16.msra.mxu0 %v1343_v18  ;;  %v1380_v13 = vld [vmem:[#allocation2 + $0x190] sm:$0xff]   ;;  %v1384_v17 = vld [vmem:[#allocation2 + $0x198] sm:$0xff]   ;;  %v1385_v18 = vld [vmem:[#allocation2 + $0x160] sm:$0xff]  }
  0x27   :  { %1262 = vmatpush3.bf16.msra.mxu1 %v1344_v19  ;;  %1241 = vmatprep.subr.bf16.mxu0 %v1345_v20  ;;  %v229_v63 = vpack.c.bf16 %v173_v55, %v101_v54  ;;  %v228_v3 = vpack.c.bf16 %v172_v60, %v100_v57  ;;  %v231_v5 = vpack.c.bf16 %v175_v0, %v103_v59  ;;  %v1386_v19 = vld [vmem:[#allocation2 + $0x1e0] sm:$0xff]   ;;  %v1393_v26 = vld [vmem:[#allocation2 + $0x170] sm:$0xff]   ;;  %v1399_v32 = vld [vmem:[#allocation2 + $0x138] sm:$0xff]  }
  0x28   :  { %1263 = vmatprep.subr.bf16.mxu1 %v1346_v21  ;;  %v230_v6 = vpack.c.bf16 %v174_v1, %v102_v61  ;;  %v1387_v20 = vld [vmem:[#allocation2 + $0x120] sm:$0xff]   ;;  %v1394_v27 = vld [vmem:[#allocation2 + $0x1f0] sm:$0xff]   ;;  %v1405_v38 = vld [vmem:[%s1680_s0 + $0x48] ss:$16 sps:$4 sm:$0xff]  }
  0x29   :  { %787 = vmatprep.mubr.bf16.mxu0 %v229_v63  ;;  %828 = vmatprep.mubr.bf16.mxu1 %v231_v5  ;;  %v1388_v21 = vld [vmem:[#allocation2 + $0x1a0] sm:$0xff]   ;;  %v1407_v39 = vld [vmem:[%s1680_s0 + $0x68] ss:$16 sps:$4 sm:$0xff]   ;;  %v1409_v40 = vld [vmem:[%s1680_s0 + $0xc] ss:$16 sps:$4 sm:$0xff]   ;;  %v186_v44 = vrot.slane %v1405_v38, %v1539_v37 }
  0x2a   :  { %1242 = vmatpush3.bf16.msra.mxu0 %v1347_v22  ;;  %v1389_v22 = vld [vmem:[#allocation2 + $0x168] sm:$0xff]   ;;  %v200_v47 = vrot.slane %v1407_v39, %v1539_v37  ;;  %v121_v48 = vrot.slane %v1409_v40, %v1539_v37 }
  0x2b   :  { %1264 = vmatpush3.bf16.msra.mxu1 %v1348_v23  ;;  %1243 = vmatprep.subr.bf16.mxu0 %v1349_v24  ;;  %v1390_v23 = vld [vmem:[#allocation2 + $0x1e8] sm:$0xff]  }
  0x2c   :  { %1265 = vmatprep.subr.bf16.mxu1 %v1350_v28  ;;  %v1391_v24 = vld [vmem:[#allocation2 + $0x128] sm:$0xff]   ;;  %v1395_v28 = vld [vmem:[#allocation2 + $0x130] sm:$0xff]   ;;  %v209_v54 = vcombine.high %v186_v44, %v200_v47  ;;  %v208_v56 = vcombine.low %v186_v44, %v200_v47 }
  0x2d   :  { %v1410_v41 = vld [vmem:[%s1680_s0 + $0x2c] ss:$16 sps:$4 sm:$0xff]   ;;  %v1413_v0 = vld [vmem:[%s1683_s3] ss:$8 sps:$4 sm:$0xff]  }
  0x2e   :  { %1244 = vmatpush3.bf16.msra.mxu0 %v1351_v29  ;;  %v1396_v29 = vld [vmem:[#allocation2 + $0x1b0] sm:$0xff]   ;;  %v1411_v45 = vld [vmem:[%s1680_s0 + $0x4c] ss:$16 sps:$4 sm:$0xff]   ;;  %v135_v49 = vrot.slane %v1410_v41, %v1539_v37  ;;  %v1419_v5 = vld [vmem:[%s1683_s3 + $0x20] ss:$8 sps:$4 sm:$0xff]  }
  0x2f   :  { %1266 = vmatpush3.bf16.msra.mxu1 %v1352_v30  ;;  %1245 = vmatprep.subr.bf16.mxu0 %v1353_v31  ;;  %v1397_v30 = vld [vmem:[#allocation2 + $0x178] sm:$0xff]   ;;  %v193_v51 = vrot.slane %v1411_v45, %v1539_v37  ;;  %v1415_v1 = vld [vmem:[%s1683_s3 + $0x4] ss:$8 sps:$4 sm:$0xff]  }
  0x30   :  { %1267 = vmatprep.subr.bf16.mxu1 %v1354_v34  ;;  %v1398_v31 = vld [vmem:[#allocation2 + $0x1f8] sm:$0xff]   ;;  %v139_v55 = vcombine.high %v121_v48, %v135_v49  ;;  %v138_v57 = vcombine.low %v121_v48, %v135_v49 }
  0x31   :  { %v1400_v34 = vld [vmem:[#allocation2 + $0x1b8] sm:$0xff]  }
  0x32   :  { %1246 = vmatpush3.bf16.msra.mxu0 %v1355_v35  ;;  %v1401_v35 = vld [vmem:[%s1680_s0 + $0x8] ss:$16 sps:$4 sm:$0xff]   ;;  %v1412_v46 = vld [vmem:[%s1680_s0 + $0x6c] ss:$16 sps:$4 sm:$0xff]  }
  0x33   :  { %1268 = vmatpush3.bf16.msra.mxu1 %v1356_v36  ;;  %1275 = vmatprep.subr.bf16.mxu0 %v1369_v53  ;;  %v1403_v36 = vld [vmem:[%s1680_s0 + $0x28] ss:$16 sps:$4 sm:$0xff]   ;;  %v114_v42 = vrot.slane %v1401_v35, %v1539_v37  ;;  %v207_v52 = vrot.slane %v1412_v46, %v1539_v37 }
  0x34   :  { %1297 = vmatprep.subr.bf16.mxu1 %v1370_v58  ;;  %v128_v43 = vrot.slane %v1403_v36, %v1539_v37 }
  0x35   :  { %788 = vmatmul.mubr.bf16.vlgmr.msra.gmra.mrb[0].mxu0 %v228_v3  ;;  %v211_v58 = vcombine.high %v193_v51, %v207_v52  ;;  %v210_v59 = vcombine.low %v193_v51, %v207_v52  ;;  %v1416_v3 = vld [vmem:[%s1683_s3 + $0x10] ss:$8 sps:$4 sm:$0xff]  }
  0x36   :  { %1276 = vmatpush3.bf16.msra.mxu0 %v1371_v62  ;;  %829 = vmatmul.mubr.bf16.vlgmr.msra.gmra.mrb[0].mxu1 %v230_v6  ;;  %v137_v50 = vcombine.high %v114_v42, %v128_v43  ;;  %v136_v53 = vcombine.low %v114_v42, %v128_v43  ;;  %v1424_v6 = vld [vmem:[%s1683_s3 + $0x34] ss:$8 sps:$4 sm:$0xff]  }
  0x37   :  { %1277 = vmatprep.subr.bf16.mxu0 %v1373_v4  ;;  %1298 = vmatpush3.bf16.msra.mxu1 %v1372_v2  ;;  %v235_v62 = vpack.c.bf16 %v211_v58, %v139_v55  ;;  %v234_v63 = vpack.c.bf16 %v210_v59, %v138_v57  ;;  %v1418_v2 = vld [vmem:[%s1683_s3 + $0x14] ss:$8 sps:$4 sm:$0xff]   ;;  %v1421_v4 = vld [vmem:[%s1683_s3 + $0x24] ss:$8 sps:$4 sm:$0xff]   ;;  %v942_v55 = vsub.s32 0, %v1536_v33  ;;  %v946_v57 = vsub.s32 1, %v1536_v33 }
  0x38   :  { %1299 = vmatprep.subr.bf16.mxu1 %v1374_v7  ;;  %v233_v60 = vpack.c.bf16 %v209_v54, %v137_v50  ;;  %v232_v61 = vpack.c.bf16 %v208_v56, %v136_v53  ;;  %v1422_v7 = vld [vmem:[%s1683_s3 + $0x30] ss:$8 sps:$4 sm:$0xff]   ;;  %v938_v56 = vld [vmem:[%s1684_s4] sm:$0x3] }
  0x39   :  { %910 = vmatprep.mubr.bf16.mxu1 %v235_v62  ;;  %v943_v58 = vrot.slane %v938_v56, %v942_v55  ;;  %v947_v59 = vrot.slane %v938_v56, %v946_v57 }
  0x3a   :  { %1278 = vmatpush3.bf16.msra.mxu0 %v1375_v8  ;;  %869 = vmatprep.mubr.bf16.mxu0 %v233_v60  ;;  %v1427_v8 = vld [vmem:[%s1683_s3 + $0x44] ss:$8 sps:$4 sm:$0xff]  }
  0x3b   :  { %1279 = vmatprep.subr.bf16.mxu0 %v1377_v10  ;;  %1300 = vmatpush3.bf16.msra.mxu1 %v1376_v9  ;;  %v1425_v9 = vld [vmem:[%s1683_s3 + $0x40] ss:$8 sps:$4 sm:$0xff]   ;;  %v1430_v10 = vld [vmem:[%s1683_s3 + $0x54] ss:$8 sps:$4 sm:$0xff]  }
  0x3c   :  { %1301 = vmatprep.subr.bf16.mxu1 %v1378_v11  ;;  %v1428_v11 = vld [vmem:[%s1683_s3 + $0x50] ss:$8 sps:$4 sm:$0xff]  }
  0x3e   :  { %1280 = vmatpush3.bf16.msra.mxu0 %v1379_v12  ;;  %v1433_v12 = vld [vmem:[%s1683_s3 + $0x64] ss:$8 sps:$4 sm:$0xff]  }
  0x3f   :  { %1281 = vmatprep.subr.bf16.mxu0 %v1381_v14  ;;  %1302 = vmatpush3.bf16.msra.mxu1 %v1380_v13  ;;  %v1431_v13 = vld [vmem:[%s1683_s3 + $0x60] ss:$8 sps:$4 sm:$0xff]   ;;  %v1436_v14 = vld [vmem:[%s1683_s3 + $0x74] ss:$8 sps:$4 sm:$0xff]  }
  0x40   :  { %1303 = vmatprep.subr.bf16.mxu1 %v1382_v15  ;;  %v1434_v15 = vld [vmem:[%s1683_s3 + $0x70] ss:$8 sps:$4 sm:$0xff]  }
  0x42   :  { %1282 = vmatpush3.bf16.msra.mxu0 %v1383_v16  ;;  %v1489_v16 = vmov 0  }
  0x43   :  { %1283 = vmatprep.subr.bf16.mxu0 %v1385_v18  ;;  %1304 = vmatpush3.bf16.msra.mxu1 %v1384_v17  ;;  %v1146_v18 = vld [vmem:[%s1682_s2] ss:$0 sm:$0xff] }
  0x44   :  { %1305 = vmatprep.subr.bf16.mxu1 %v1386_v19 }
  0x46   :  { %1284 = vmatpush3.bf16.msra.mxu0 %v1387_v20 }
  0x47   :  { %1285 = vmatprep.subr.bf16.mxu0 %v1389_v22  ;;  %1306 = vmatpush3.bf16.msra.mxu1 %v1388_v21 }
  0x48   :  { %1307 = vmatprep.subr.bf16.mxu1 %v1390_v23 }
  0x4a   :  { %1286 = vmatpush3.bf16.msra.mxu0 %v1391_v24 }
  0x4b   :  { %1287 = vmatprep.subr.bf16.mxu0 %v1393_v26  ;;  %1308 = vmatpush3.bf16.msra.mxu1 %v1392_v25 }
  0x4c   :  { %1309 = vmatprep.subr.bf16.mxu1 %v1394_v27 }
  0x4e   :  { %1288 = vmatpush3.bf16.msra.mxu0 %v1395_v28 }
  0x4f   :  { %1289 = vmatprep.subr.bf16.mxu0 %v1397_v30  ;;  %1310 = vmatpush3.bf16.msra.mxu1 %v1396_v29 }
  0x50   :  { %1311 = vmatprep.subr.bf16.mxu1 %v1398_v31 }
  0x52   :  { %1290 = vmatpush3.bf16.msra.mxu0 %v1399_v32 }
  0x53   :  { %1312 = vmatpush3.bf16.msra.mxu1 %v1400_v34  ;;  %1030 = vmatprep.subr.bf16.mxu0 %v1415_v1 }
  0x55   :  { %870 = vmatmul.mubr.bf16.vlgmr.msra.gmra.mrb[4].mxu0 %v232_v61 }
  0x56   :  { %911 = vmatmul.mubr.bf16.vlgmr.msra.gmra.mrb[4].mxu1 %v234_v63  ;;  %1031 = vmatpush1.bf16.msra.mxu0 %v1413_v0 }
  0x57   :  { %1032 = vmatprep.subr.bf16.mxu0 %v1418_v2  ;;  %1062 = vmatprep.mubr.bf16.mxu0 %v1489_v16 }
  0x5a   :  { %1033 = vmatpush1.bf16.msra.mxu0 %v1416_v3 }
  0x5b   :  { %1034 = vmatprep.subr.bf16.mxu0 %v1421_v4 }
  0x5e   :  { %1035 = vmatpush1.bf16.msra.mxu0 %v1419_v5 }
  0x5f   :  { %1036 = vmatprep.subr.bf16.mxu0 %v1424_v6 }
  0x62   :  { %1037 = vmatpush1.bf16.msra.mxu0 %v1422_v7 }
  0x63   :  { %1038 = vmatprep.subr.bf16.mxu0 %v1427_v8 }
  0x66   :  { %1039 = vmatpush1.bf16.msra.mxu0 %v1425_v9 }
  0x67   :  { %1040 = vmatprep.subr.bf16.mxu0 %v1430_v10 }
  0x6a   :  { %1041 = vmatpush1.bf16.msra.mxu0 %v1428_v11 }
  0x6b   :  { %1042 = vmatprep.subr.bf16.mxu0 %v1433_v12 }
  0x6e   :  { %1043 = vmatpush1.bf16.msra.mxu0 %v1431_v13 }
  0x6f   :  { %1044 = vmatprep.subr.bf16.mxu0 %v1436_v14 }
  0x72   :  { %1045 = vmatpush1.bf16.msra.mxu0 %v1434_v15 }
 0x108   :  { %v1247_v17 = vpop.f32.mrb[0].mxu0 }
 0x109   :  { %v1248_v19 = vpop.f32.mrb[1].mxu0  ;;  %v1269_v20 = vpop.f32.mrb[0].mxu1 }
 0x10a   :  { %v1249_v21 = vadd.f32 %v1248_v19, %v1247_v17  ;;  %v1250_v22 = vpop.f32.mrb[2].mxu0  ;;  %v1270_v23 = vpop.f32.mrb[1].mxu1 }
 0x10b   :  { %v1251_v24 = vpop.f32.mrb[3].mxu0  ;;  %v1271_v26 = vadd.f32 %v1270_v23, %v1269_v20  ;;  %v1272_v27 = vpop.f32.mrb[2].mxu1 }
 0x10c   :  { %v790_v25 = vadd.f32 %v1249_v21, %v1146_v18  ;;  %v1252_v28 = vadd.f32 %v1251_v24, %v1250_v22  ;;  %v1273_v29 = vpop.f32.mrb[3].mxu1 }
 0x10d   :  { %v1274_v32 = vadd.f32 %v1273_v29, %v1272_v27 }
 0x10e   :  { %v831_v30 = vadd.f32 %v1271_v26, %v790_v25  ;;  %v793_v31 = vadd.f32 %v1252_v28, %v1146_v18 }
 0x110   :  { %v834_v34 = vadd.f32 %v1274_v32, %v793_v31 }
 0x128   :  { %v1291_v35 = vpop.f32.mrb[4].mxu0 }
 0x129   :  { %v1313_v36 = vpop.f32.mrb[4].mxu1  ;;  %v1292_v38 = vpop.f32.mrb[5].mxu0 }
 0x12a   :  { %v1293_v39 = vadd.f32 %v1292_v38, %v1291_v35  ;;  %v1314_v40 = vpop.f32.mrb[5].mxu1  ;;  %v1294_v41 = vpop.f32.mrb[6].mxu0 }
 0x12b   :  { %v1315_v42 = vadd.f32 %v1314_v40, %v1313_v36  ;;  %v1316_v43 = vpop.f32.mrb[6].mxu1  ;;  %v1295_v44 = vpop.f32.mrb[7].mxu0 }
 0x12c   :  { %v872_v45 = vadd.f32 %v1293_v39, %v831_v30  ;;  %v1296_v46 = vadd.f32 %v1295_v44, %v1294_v41  ;;  %v1317_v47 = vpop.f32.mrb[7].mxu1 }
 0x12d   :  { %v1318_v48 = vadd.f32 %v1317_v47, %v1316_v43 }
 0x12e   :  { %v913_v49 = vadd.f32 %v1315_v42, %v872_v45  ;;  %v875_v50 = vadd.f32 %v1296_v46, %v834_v34 }
 0x130   :  { %v916_v51 = vadd.f32 %v1318_v48, %v875_v50  ;;  %v919_v52 = vmax.f32 %v913_v49, 0.0 }
 0x132   :  { %v920_v53 = vmax.f32 %v916_v51, 0.0 }
 0x134   :  { %v921_v54 = vpack.c.bf16 %v920_v53, %v919_v52 }
 0x136   :  { %1063 = vmatmul.mubr.bf16.vlgmr.msra.gmra.mrb[8].mxu0 %v921_v54 }
 0x209   :  { %v1064_v60 = vpop.f32.mrb[8].mxu0 }
 0x20a   :  { %v1065_v61 = vadd.f32 %v1064_v60, %v943_v58  ;;  %v1066_v62 = vpop.f32.mrb[9].mxu0 }
 0x20b   :  { %v1067_v63 = vadd.f32 %v1066_v62, %v947_v59  ;;  %v1068_v0 = vpop.f32.mrb[10].mxu0 }
 0x20c   :  { %v1069_v1 = vadd.f32 %v1068_v0, %v943_v58  ;;  %v1070_v2 = vpop.f32.mrb[11].mxu0 }
 0x20d   :  { %v1077_v3 = vcombine.low %v1065_v61, %v1067_v63  ;;  %v1078_v4 = vcombine.high %v1065_v61, %v1067_v63  ;;  %v1071_v5 = vadd.f32 %v1070_v2, %v947_v59 }
 0x20f   :  { %v1085_v6 = vrot.slane %v1077_v3, %v1539_v37  ;;  %v1092_v7 = vrot.slane %v1078_v4, %v1539_v37  ;;  %1227 = vst.sshfl [vmem:[#allocation5] sm:$0x33 pattern:$0x76325410] %v1077_v3  ;;  %v1095_v8 = vcombine.low %v1069_v1, %v1071_v5  ;;  %v1096_v33 = vcombine.high %v1069_v1, %v1071_v5 }
 0x210   :  { %1228 = vst.sshfl [vmem:[#allocation5 + $0x8] sm:$0x33 pattern:$0x76325410] %v1078_v4 }
 0x211   :  { %v1093_v9 = vcombine.high %v1085_v6, %v1085_v6  ;;  %v1094_v10 = vcombine.high %v1092_v7, %v1092_v7  ;;  %v1103_v11 = vrot.slane %v1095_v8, %v1539_v37  ;;  %v1110_v12 = vrot.slane %v1096_v33, %v1539_v37  ;;  %1229 = vst.sshfl [vmem:[#allocation5 + $0x10] sm:$0x33 pattern:$0x76325410] %v1095_v8 }
 0x212   :  { %1230 = vst.sshfl [vmem:[#allocation5 + $0x18] sm:$0x33 pattern:$0x76325410] %v1096_v33 }
 0x213   :  { %1122 = vst [vmem:[#allocation5 + $0x4] sm:$0xf] %v1093_v9  ;;  %1124 = vst [vmem:[#allocation5 + $0xc] sm:$0xf] %v1094_v10  ;;  %v1111_v13 = vcombine.high %v1103_v11, %v1103_v11  ;;  %v1112_v14 = vcombine.high %v1110_v12, %v1110_v12 }
 0x215   :  { %1126 = vst [vmem:[#allocation5 + $0x14] sm:$0xf] %v1111_v13  ;;  %1128 = vst [vmem:[#allocation5 + $0x1c] sm:$0xf] %v1112_v14 }
 0x216   :  { %1133 = vsyncadd [#allocation4], 448  ;;  %s1490_s4 = smov [#allocation5]  }
 0x217   :  { %s1134_s22 = sshll.u32 %s1490_s4, 4  ;;  %s1135_s22 = int_to_ptr.vmem [resolvable:$true] %s1134_s22 }
 0x218   :  { %s1459_s23 = scalar_lea.vmem %s1135_s22, 64  ;;  %s1463_s24 = scalar_lea.vmem %s1135_s22, 512 }
 0x219   :  { %p1460_p8 = scmp.ne.s32.totalorder %s1135_s22, %s1459_s23  ;;  %p1464_p9 = scmp.lt.s32.totalorder %s1135_s22, %s1135_s22 }
 0x21a   :  { %p1465_p10 = scmp.lt.s32.totalorder %s1463_s24, %s1459_s23 }
 0x21c   :  { %p1466_p11 = por %p1465_p10, %p1464_p9 }
 0x21e   :  { %p1467_p12 = pnand %p1466_p11, %p1460_p8 }
 0x220   :  { %1470 = shalt.err (!%p1467_p12)
}
 0x221   :  { %s1471_s27 = scalar_lea.hbm %s1685_s5, 64 }
 0x222   :  { %p1472_p13 = scmp.ne.s32.totalorder %s1685_s5, %s1471_s27  ;;  %p1475_p0 = scmp.lt.u32.totalorder %s1471_s27, %s1685_s5 }
 0x224   :  { %p1477_p1 = pnand %p1475_p0, %p1472_p13 }
 0x226   :  { %1480 = shalt.err (!%p1477_p1)
}
 0x227   :  { %1140 = dma.vmem_to_hbm [thread:$0]  %s1135_s22, 64, %s1685_s5, [#allocation4], %s1486_s28, %s1486_s28, %s1487_s29  }
 0x228   :  { %1483 = dma.done.wait [#allocation4], 512  }
 0x229   :  { %1484 = vsyncadd [#allocation4], 4294966784 }
 0x22a   :  { %1144 = vsyncpa [#allocation3], 1 }
 0x22b   :  { %1145 = vsyncpa [#allocation4], 1 }

</bundles_post_ra>
